<compile_context>
chip_gen: v6e
topology: v6e:2x2x1
jax: 0.10.0
libtpu: 0.0.40
codegen_flags: <defaults>
</compile_context>

<pallas_src>
import functools

import jax
import jax.numpy as jnp
import numpy as np
from jax import lax
from jax.experimental import pallas as pl
from jax.experimental.pallas import tpu as pltpu

_TK_MAX = 2048                 # max K-tile (lane-aligned); sweep knob
_F_TILE_BUDGET = 16 << 20      # VMEM budget for the double-buffered F tile
_FEATURE_DTYPE = jnp.float32   # set to jnp.bfloat16 to halve streamed bytes
                               # (relax the tolerances in __main__ accordingly)


# ----------------------------------------------------------------------------
# Kernels
# ----------------------------------------------------------------------------
def _partial_gram_kernel(f_ref, pg_ref, *, k_total, tk, tpc, need_mask):
    """pg[core] += F_tile @ F_tile.T (contraction on the lane axis of both)."""
    c = pl.program_id(0)   # core index (parallel axis)
    k = pl.program_id(1)   # K-tile index within this core (reduction axis)

    @pl.when(k == 0)
    def _():
        pg_ref[...] = jnp.zeros_like(pg_ref)

    f = f_ref[...]                               # (m, tk)
    if need_mask:
        # Zero columns past the true K: covers the ragged edge block and the
        # duplicated (index-clamped) tail tile of the last core.
        base = (c * tpc + k) * tk
        col = base + lax.broadcasted_iota(jnp.int32, f.shape, 1)
        f = jnp.where(col < k_total, f, 0)

    pg_ref[...] += lax.dot_general(
        f, f,
        dimension_numbers=(((1,), (1,)), ((), ())),   # F @ F.T without .T
        preferred_element_type=jnp.float32,
        precision=lax.Precision.HIGHEST,
    )


def _combine_kernel(pg_ref, g_ref, *, scale):
    """G = sum_over_cores(partials) * scale."""
    g_ref[...] = (jnp.sum(pg_ref[...], axis=0) * scale).astype(g_ref.dtype)


def _combine_mse_kernel(pg_ref, tgt_ref, g_ref, loss_ref, *, scale, inv_denom):
    """G = sum(partials) * scale; loss = mean((G - target)^2)."""
    g = jnp.sum(pg_ref[...], axis=0) * scale
    g_ref[...] = g.astype(g_ref.dtype)
    diff = g - tgt_ref[...]
    loss_ref[...] = jnp.reshape(jnp.sum(diff * diff) * inv_denom, (1, 1))


# ----------------------------------------------------------------------------
# Wrappers
# ----------------------------------------------------------------------------
def _choose_tk(m, k, itemsize):
    if k <= _TK_MAX:
        return int(k)          # one full-K tile (block dim == full array dim)
    cols = (_F_TILE_BUDGET // (2 * m * itemsize)) // 128 * 128
    return int(max(128, min(_TK_MAX, cols)))


def _vmem_limit_bytes(m, tk, itemsize):
    # double-buffered F tile + resident Gram block(s) + headroom; capped for v7x
    need = 2 * m * tk * itemsize + 2 * m * m * 4 + (4 << 20)
    return int(min(max(need, 32 << 20), 64 << 20))


def _partial_grams(x):
    """NCHW (a,b,c,d) -> per-core partial Grams (ncores, a*b, a*b), unscaled."""
    a, b, c, d = x.shape
    m, k = a * b, c * d
    f = x.reshape(m, k)
    if f.dtype != _FEATURE_DTYPE:
        f = f.astype(_FEATURE_DTYPE)
    itemsize = jnp.dtype(_FEATURE_DTYPE).itemsize

    tk = _choose_tk(m, k, itemsize)
    n_tiles = pl.cdiv(k, tk)
    ncores = 2 if n_tiles >= 2 else 1     # K-split across TCs on v7x; 1-TC chips just loop
    tpc = pl.cdiv(n_tiles, ncores)        # K-tiles per core
    need_mask = (k % tk != 0) or (ncores * tpc != n_tiles)

    if ncores * tpc > n_tiles:
        # Uneven split: clamp duplicated tail-tile indices in-bounds; the
        # kernel zero-masks their columns so they contribute nothing.
        f_map = lambda ci, ki: (0, jnp.minimum(ci * tpc + ki, n_tiles - 1))
    else:
        f_map = lambda ci, ki: (0, ci * tpc + ki)

    partials = pl.pallas_call(
        functools.partial(_partial_gram_kernel, k_total=k, tk=tk, tpc=tpc,
                          need_mask=need_mask),
        out_shape=jax.ShapeDtypeStruct((ncores, m, m), jnp.float32),
        grid_spec=pltpu.PrefetchScalarGridSpec(
            num_scalar_prefetch=0,
            grid=(ncores, tpc),
            # NOTE: default double-buffering; pipeline_mode=pl.Buffered(3) on
            # this spec is a worthwhile sweep when DMA latency is exposed.
            in_specs=[pl.BlockSpec((m, tk), f_map)],
            # Output block index is constant over the K axis -> it stays
            # VMEM-resident and we accumulate into it directly (no scratch).
            out_specs=pl.BlockSpec((None, m, m), lambda ci, ki: (ci, 0, 0)),
        ),
        compiler_params=pltpu.CompilerParams(
            dimension_semantics=("parallel", "arbitrary"),
            vmem_limit_bytes=_vmem_limit_bytes(m, tk, itemsize),
        ),
    )(f)
    return partials, float(a * b * c * d)


def gram_matrix_pallas(x):
    """gram_matrix(x) = (F @ F.T) / (a*b*c*d), computed on the MXU."""
    partials, n_elems = _partial_grams(x)
    m = partials.shape[-1]
    return pl.pallas_call(
        functools.partial(_combine_kernel, scale=1.0 / n_elems),
        out_shape=jax.ShapeDtypeStruct((m, m), jnp.float32),
    )(partials)


def style_loss_forward_pallas(x, target_gram):
    """Returns (G, loss) with loss = mse(G, target_gram). The module's forward
    return value is x itself (identity pass-through)."""
    partials, n_elems = _partial_grams(x)
    m = partials.shape[-1]
    g, loss = pl.pallas_call(
        functools.partial(_combine_mse_kernel, scale=1.0 / n_elems,
                          inv_denom=1.0 / float(m * m)),
        out_shape=(jax.ShapeDtypeStruct((m, m), jnp.float32),
                   jax.ShapeDtypeStruct((1, 1), jnp.float32)),
    )(partials, target_gram)
    return g, loss[0, 0]


class StyleLossPallas:
    """Mirror of the PyTorch StyleLoss module (forward only)."""

    def __init__(self, target_feature):
        # torch's .detach() == fixed (no-grad) target values; same numbers here.
        self.target = gram_matrix_pallas(target_feature)
        self.loss = None

    def __call__(self, x):
        _, loss = style_loss_forward_pallas(x, self.target)
        self.loss = loss
        return x   # forward returns the input unchanged


# ----------------------------------------------------------------------------
# Reference (host numpy, fp64) for correctness checks
# ----------------------------------------------------------------------------
def _gram_ref_np(x):
    a, b, c, d = x.shape
    f = np.asarray(x, dtype=np.float64).reshape(a * b, c * d)
    return (f @ f.T) / (a * b * c * d)


if __name__ == "__main__":
    key = jax.random.PRNGKey(0)

    # Shapes: (a) K fits in one tile, (b) 2 K-tiles with a ragged tail (uses
    # both cores + in-kernel masking), (c) 3 K-tiles -> uneven core split
    # exercises the clamp + full-tile mask path.
    shapes = [(2, 4, 16, 16), (1, 8, 48, 48), (1, 8, 72, 72)]

    for shape in shapes:
        key, k_tgt, k_in = jax.random.split(key, 3)
        target_feature = jax.random.normal(k_tgt, shape, dtype=jnp.float32)
        x = jax.random.normal(k_in, shape, dtype=jnp.float32)

        module = StyleLossPallas(target_feature)
        out = jax.block_until_ready(module(x))
        loss = float(jax.block_until_ready(module.loss))

        g_t_ref = _gram_ref_np(target_feature)
        g_x_ref = _gram_ref_np(x)
        loss_ref = float(np.mean((g_x_ref - g_t_ref) ** 2))

        assert out.shape == x.shape and bool(jnp.all(out == x))
        np.testing.assert_allclose(np.asarray(module.target), g_t_ref,
                                   rtol=5e-4, atol=1e-5)
        np.testing.assert_allclose(loss, loss_ref, rtol=5e-3, atol=1e-9)

    print("KERNEL_OK")
</pallas_src>

<mosaic_0001>
module attributes {stable_mosaic.version = 11 : i64} {
  func.func @_partial_gram_kernel(%arg0: i32, %arg1: i32, %arg2: memref<8x256xf32, #tpu.memory_space<vmem>>, %arg3: memref<1x8x8xf32, #tpu.memory_space<vmem>>) attributes {dimension_semantics = [#tpu.dimension_semantics<parallel>, #tpu.dimension_semantics<arbitrary>], iteration_bounds = array<i64: 1, 1>, scalar_prefetch = 0 : i64, scratch_operands = 0 : i64, tpu.core_type = #tpu.core_type<tc>, window_params = [{transform_indices = @transform_0, window_bounds = array<i64: 8, 256>}, {transform_indices = @transform_1, window_bounds = array<i64: 1, 8, 8>}]} {
    %c0_i32 = arith.constant 0 : i32
    %0 = arith.cmpi eq, %arg1, %c0_i32 : i32
    %1 = arith.extui %0 : i1 to i32
    %c0_i32_0 = arith.constant 0 : i32
    %2 = arith.cmpi ne, %1, %c0_i32_0 : i32
    scf.if %2 {
      %cst_8 = arith.constant 0.000000e+00 : f32
      %11 = vector.broadcast %cst_8 : f32 to vector<8x8xf32>
      %c0_9 = arith.constant 0 : index
      %c0_10 = arith.constant 0 : index
      %c0_11 = arith.constant 0 : index
      %12 = vector.load %arg3[%c0_9, %c0_10, %c0_11] : memref<1x8x8xf32, #tpu.memory_space<vmem>>, vector<1x8x8xf32>
      %13 = vector.shape_cast %12 : vector<1x8x8xf32> to vector<8x8xf32>
      %14 = vector.shape_cast %11 : vector<8x8xf32> to vector<1x8x8xf32>
      tpu.vector_store %arg3[%c0_9, %c0_10, %c0_11], %14 {strides = array<i32>} : memref<1x8x8xf32, #tpu.memory_space<vmem>>, vector<1x8x8xf32>,
    } else {
    }
    %c0 = arith.constant 0 : index
    %c0_1 = arith.constant 0 : index
    %3 = vector.load %arg2[%c0, %c0_1] : memref<8x256xf32, #tpu.memory_space<vmem>>, vector<8x256xf32>
    %c0_2 = arith.constant 0 : index
    %c0_3 = arith.constant 0 : index
    %c0_4 = arith.constant 0 : index
    %4 = vector.load %arg3[%c0_2, %c0_3, %c0_4] : memref<1x8x8xf32, #tpu.memory_space<vmem>>, vector<1x8x8xf32>
    %5 = vector.shape_cast %4 : vector<1x8x8xf32> to vector<8x8xf32>
    %cst = arith.constant dense<0.000000e+00> : vector<8x8xf32>
    %6 = tpu.matmul %3, %3, %cst {dimension_numbers = #tpu.dot_dimension_numbers<[1], [1], [0], [0], [0, 0, 1, 0], [], []>, precision = #tpu.contract_precision<fp32>} : vector<8x256xf32>, vector<8x256xf32>, vector<8x8xf32> -> vector<8x8xf32>
    %7 = arith.addf %5, %6 : vector<8x8xf32>
    %c0_5 = arith.constant 0 : index
    %c0_6 = arith.constant 0 : index
    %c0_7 = arith.constant 0 : index
    %8 = vector.load %arg3[%c0_5, %c0_6, %c0_7] : memref<1x8x8xf32, #tpu.memory_space<vmem>>, vector<1x8x8xf32>
    %9 = vector.shape_cast %8 : vector<1x8x8xf32> to vector<8x8xf32>
    %10 = vector.shape_cast %7 : vector<8x8xf32> to vector<1x8x8xf32>
    tpu.vector_store %arg3[%c0_5, %c0_6, %c0_7], %10 {strides = array<i32>} : memref<1x8x8xf32, #tpu.memory_space<vmem>>, vector<1x8x8xf32>,
    return
  }
  func.func @transform_0(%arg0: i32, %arg1: i32) -> (i32, i32) {
    %c1_i32 = arith.constant 1 : i32
    %0 = arith.muli %arg0, %c1_i32 : i32
    %1 = arith.addi %0, %arg1 : i32
    %c0_i32 = arith.constant 0 : i32
    %c0_i32_0 = arith.constant 0 : i32
    return %c0_i32, %1 : i32, i32
  }
  func.func @transform_1(%arg0: i32, %arg1: i32) -> (i32, i32, i32) {
    %c0_i32 = arith.constant 0 : i32
    %c0_i32_0 = arith.constant 0 : i32
    %c0_i32_1 = arith.constant 0 : i32
    return %arg0, %c0_i32, %c0_i32_0 : i32, i32, i32
  }
}

</mosaic_0001>

<bundles_post_ra>
// kernel: tpu_custom_call.1
= control target key start
LH: loop header
LB: loop body
LE: loop exit
PB: predicated region body
PF: predicated region fallthrough
CT: control target
= control target key end

     0   :  { %6 = vsyncpa [#allocation3], 0  ;;  %s594_s0 = inlined_call_operand.hbm [shape: f32[8,256], index: 0, kind: input, shape index: {}]   ;;  %s595_s1 = inlined_call_operand.hbm [shape: f32[1,8,8], index: 1, kind: output, shape index: {}]  }
   0x1   :  { %7 = vsyncpa [#allocation4], 0  ;;  %s573_s6 = smov [#allocation2]  }
   0x2   :  { %s18_s7 = sshll.u32 %s573_s6, 4  ;;  %s19_s7 = int_to_ptr.vmem [resolvable:$true] %s18_s7 }
   0x3   :  { %s537_s8 = scalar_lea.vmem %s19_s7, 256  ;;  %p542_p1 = scmp.lt.s32.totalorder %s19_s7, %s19_s7 }
   0x4   :  { %p538_p0 = scmp.ne.s32.totalorder %s19_s7, %s537_s8  ;;  %p543_p2 = scmp.lt.s32.totalorder %s537_s8, %s537_s8 }
   0x6   :  { %p544_p3 = por %p543_p2, %p542_p1 }
   0x8   :  { %p545_p4 = pnand %p544_p3, %p538_p0 }
   0xa   :  { %548 = shalt.err (!%p545_p4)
}
   0xb   :  { %21 = dma.hbm_to_vmem [thread:$0]  %s594_s0, 256, %s19_s7, [#allocation3]  }
   0xc   :  { %569 = dma.done.wait [#allocation3], 256  }
   0xd   :  { %570 = vsyncadd [#allocation3], 4294967040  ;;  %vm31_vm0 = vcmask 64512   ;;  %v574_v0 = vmov 0.0   ;;  %v34_v1 = vld [vmem:[#allocation2 + $0x8] sm:$0xff]  ;;  %v33_v2 = vld [vmem:[#allocation2] sm:$0xff] }
   0xe   :  { %32 = vst.msk [vmem:[#allocation5] sm:$0xff] %vm31_vm0, %v574_v0  ;;  %v66_v3 = vand.u32 4294901760, %v34_v1  ;;  %v68_v4 = vand.u32 4294901760, %v33_v2  ;;  %s575_s0 = smov [#allocation5]  }
   0xf   :  { %s517_s11 = sshll.u32 %s575_s0, 4  ;;  %s518_s11 = int_to_ptr.vmem [resolvable:$true] %s517_s11 }
  0x10   :  { %67 = vmatprep.subr.mxu0 %v66_v3  ;;  %v103_v5 = vsub.f32 %v34_v1, %v66_v3  ;;  %v109_v6 = vsub.f32 %v33_v2, %v68_v4  ;;  %193 = vmatprep.mubr.f32.mxu1 %v66_v3  ;;  %s549_s12 = scalar_lea.vmem %s518_s11, 128  ;;  %p554_p6 = scmp.lt.s32.totalorder %s518_s11, %s518_s11 }
  0x11   :  { %69 = vmatpush1.xpose.msra.mxu0 %v68_v4  ;;  %p550_p5 = scmp.ne.s32.totalorder %s518_s11, %s549_s12  ;;  %p555_p7 = scmp.lt.s32.totalorder %s549_s12, %s549_s12 }
  0x12   :  { %v104_v7 = vand.u32 4294901760, %v103_v5  ;;  %v110_v8 = vand.u32 4294901760, %v109_v6  ;;  %232 = vmatprep.subr.mxu0 %v103_v5 }
  0x13   :  { %p556_p8 = por %p555_p7, %p554_p6 }
  0x14   :  { %v105_v9 = vsub.f32 %v103_v5, %v104_v7  ;;  %v111_v10 = vsub.f32 %v109_v6, %v110_v8 }
  0x15   :  { %v35_v27 = vld [vmem:[#allocation5] sm:$0xff]  ;;  %p557_p9 = pnand %p556_p8, %p550_p5 }
  0x16   :  { %v106_v11 = vand.u32 4294901760, %v105_v9  ;;  %v112_v12 = vand.u32 4294901760, %v111_v10 }
  0x18   :  { %107 = vmatprep.mubr.f32.mxu0 %v106_v11  ;;  %153 = vmatprep.subr.mxu1 %v106_v11 }
  0x19   :  { %113 = vmatmul.mubr.f32.vlgmr.msra.gmra.mxu0 %v112_v12  ;;  %159 = vmatpush1.xpose.msra.mxu1 %v112_v12 }
  0x1a   :  { %235 = vmatpush1.xpose.msra.mxu0 %v109_v6  ;;  %270 = vmatprep.mubr.f32.mxu0 %v103_v5 }
  0x1b   :  { %309 = vmatprep.subr.mxu1 %v66_v3  ;;  %389 = vmatprep.subr.mxu0 %v104_v7 }
  0x1c   :  { %195 = vmatmul.mubr.f32.vlgmr.msra.gmra.mxu1 %v68_v4 }
  0x1d   :  { %273 = vmatmul.mubr.f32.vlgmr.msra.gmra.mxu0 %v109_v6  ;;  %311 = vmatpush1.xpose.msra.mxu1 %v68_v4 }
  0x1e   :  { %393 = vmatpush1.xpose.msra.mxu0 %v110_v8  ;;  %347 = vmatprep.mubr.f32.mxu1 %v104_v7 }
  0x1f   :  { %427 = vmatprep.mubr.f32.mxu0 %v66_v3  ;;  %465 = vmatprep.subr.mxu1 %v66_v3 }
  0x20   :  { %351 = vmatmul.mubr.f32.vlgmr.msra.gmra.mxu1 %v110_v8 }
  0x21   :  { %429 = vmatmul.mubr.f32.vlgmr.msra.gmra.mxu0 %v68_v4  ;;  %467 = vmatpush1.xpose.msra.mxu1 %v68_v4 }
  0x22   :  { %501 = vmatprep.mubr.f32.mxu1 %v66_v3 }
  0x24   :  { %503 = vmatmul.mubr.f32.vlgmr.msra.gmra.mxu1 %v68_v4 }
  0xd9   :  { %v114_v13 = vpop.f32.mrf.mxu0 }
  0xdb   :  { %v116_v14 = vpop.f32.mrf.mxu0 }
  0xdc   :  { %v196_v15 = vpop.f32.mrf.mxu1 }
  0xdd   :  { %v197_v16 = vadd.f32 %v196_v15, %v114_v13  ;;  %v274_v17 = vpop.f32.mrf.mxu0 }
  0xde   :  { %v198_v18 = vpop.f32.mrf.mxu1 }
  0xdf   :  { %v275_v19 = vadd.f32 %v274_v17, %v197_v16  ;;  %v276_v20 = vpop.f32.mrf.mxu0 }
  0xe0   :  { %v352_v21 = vpop.f32.mrf.mxu1 }
  0xe1   :  { %v353_v22 = vadd.f32 %v352_v21, %v275_v19  ;;  %v430_v23 = vpop.f32.mrf.mxu0 }
  0xe2   :  { %v354_v24 = vpop.f32.mrf.mxu1 }
  0xe3   :  { %v431_v25 = vadd.f32 %v430_v23, %v353_v22  ;;  %v432_v26 = vpop.f32.mrf.mxu0 }
  0xe4   :  { %v504_v28 = vpop.f32.mrf.mxu1 }
  0xe5   :  { %v505_v29 = vadd.f32 %v504_v28, %v431_v25 }
  0xe6   :  { %v506_v30 = vpop.f32.mrf.mxu1 }
  0xe7   :  { %v508_v31 = vadd.f32 %v505_v29, %v35_v27 }
  0xe9   :  { %510 = vst.msk [vmem:[#allocation5] sm:$0xff] %vm31_vm0, %v508_v31 }
  0xea   :  { %560 = shalt.err (!%p557_p9)
}
  0xeb   :  { %520 = dma.vmem_to_hbm [thread:$0]  %s518_s11, 128, %s595_s1, [#allocation4]  }
  0xec   :  { %571 = dma.done.wait [#allocation4], 128  }
  0xed   :  { %572 = vsyncadd [#allocation4], 4294967168 }
  0xee   :  { %524 = vsyncpa [#allocation3], 1 }
  0xef   :  { %525 = vsyncpa [#allocation4], 1 }

</bundles_post_ra>
